<compile_context>
chip_gen: v7x
topology: tpu7x:2x2x1
jax: 0.10.0
libtpu: 0.0.40
codegen_flags: <defaults>
</compile_context>

<pallas_src>
import jax
import jax.numpy as jnp
from jax.experimental import pallas as pl
from jax.experimental.pallas import tpu as pltpu

EPS = 1e-5  # torch.nn.LayerNorm default

# Safe on every current chip (v5e/v6e: 128 MiB VMEM, v7x: 64 MiB per TC).
_VMEM_LIMIT = 48 * 1024 * 1024
_VMEM_BUDGET = _VMEM_LIMIT - 4 * 1024 * 1024  # leave headroom for the compiler


def _merge_ln_linear_kernel(x_ref, g_ref, b_ref, w_ref, o_ref):
    # x_ref: (tm, D) tile of merged tokens
    # g_ref, b_ref: (1, D) LayerNorm gamma / beta
    # w_ref: (D, D) = W.T of the bias-free Linear
    x = x_ref[...].astype(jnp.float32)
    mean = jnp.mean(x, axis=-1, keepdims=True)
    xc = x - mean
    var = jnp.mean(xc * xc, axis=-1, keepdims=True)
    xn = xc * jax.lax.rsqrt(var + EPS)          # EUP rsqrt (free slot)
    y = xn * g_ref[...].astype(jnp.float32) + b_ref[...].astype(jnp.float32)
    o_ref[...] = jnp.dot(
        y, w_ref[...].astype(jnp.float32),
        preferred_element_type=jnp.float32,
    ).astype(o_ref.dtype)


def _pick_row_tile(m: int, d: int, x_itemsize: int, w_itemsize: int,
                   tm_max: int) -> int:
    """Largest sublane-aligned row tile that fits the VMEM budget."""
    # Fixed residents: W.T block (assume double-buffered) + gamma/beta.
    fixed = 2 * d * d * w_itemsize + 4 * d * 4
    avail = max(_VMEM_BUDGET - fixed, 2 * 1024 * 1024)
    # Per-row: in tile (x2 buffers) + out tile (x2) + ~3 f32 temporaries.
    per_row = 2 * d * x_itemsize + 2 * d * x_itemsize + 3 * d * 4
    tm_cap = max(8, (avail // per_row) // 8 * 8)
    m_up = max(8, ((m + 7) // 8) * 8)
    return min(tm_max, tm_cap, m_up)


def patch_merging_1d(x: jax.Array, weight: jax.Array, gamma: jax.Array,
                     beta: jax.Array, *, tm: int = 512) -> jax.Array:
    """x: (b, h, c); weight: (2c, 2c) torch Linear layout (out, in);
    gamma/beta: (2c,). Returns (b, ceil(h/2), 2c)."""
    b, h, c = x.shape
    if h % 2 == 1:
        x = jnp.pad(x, ((0, 0), (0, 1), (0, 0)))  # zero-pad seq to even
    h2 = x.shape[1] // 2
    d = 2 * c
    m = b * h2

    # Token-pair merge == contiguous reshape (cat of even/odd rows on channel).
    x2 = x.reshape(m, d)

    x_itemsize = jnp.dtype(x.dtype).itemsize
    w_itemsize = jnp.dtype(weight.dtype).itemsize
    tm_eff = _pick_row_tile(m, d, x_itemsize, w_itemsize, tm)

    m_pad = pl.cdiv(m, tm_eff) * tm_eff
    if m_pad != m:
        # Padded rows normalize to beta (var+eps > 0 -> finite) and are sliced off.
        x2 = jnp.pad(x2, ((0, m_pad - m), (0, 0)))

    w_t = weight.T                      # kernel computes y @ W.T
    g2 = gamma.reshape(1, d)
    b2 = beta.reshape(1, d)

    cost = pl.CostEstimate(
        flops=int(2 * m_pad * d * d + 8 * m_pad * d),
        transcendentals=int(m_pad),
        bytes_accessed=int(2 * m_pad * d * x_itemsize
                           + d * d * w_itemsize + 2 * d * 4),
    )

    out = pl.pallas_call(
        _merge_ln_linear_kernel,
        out_shape=jax.ShapeDtypeStruct((m_pad, d), x.dtype),
        grid=(m_pad // tm_eff,),
        in_specs=[
            pl.BlockSpec((tm_eff, d), lambda i: (i, 0)),   # x tile
            pl.BlockSpec((1, d), lambda i: (0, 0)),        # gamma
            pl.BlockSpec((1, d), lambda i: (0, 0)),        # beta
            pl.BlockSpec((d, d), lambda i: (0, 0)),        # W.T (resident)
        ],
        out_specs=pl.BlockSpec((tm_eff, d), lambda i: (i, 0)),
        compiler_params=pltpu.CompilerParams(
            dimension_semantics=("parallel",),
            vmem_limit_bytes=_VMEM_LIMIT,
        ),
        cost_estimate=cost,
    )(x2, g2, b2, w_t)

    return out[:m].reshape(b, h2, d)


def _reference(x, weight, gamma, beta):
    b, h, c = x.shape
    if h % 2 == 1:
        x = jnp.pad(x, ((0, 0), (0, 1), (0, 0)))
    h2 = x.shape[1] // 2
    xm = x.reshape(b, h2, 2 * c).astype(jnp.float32)
    mean = jnp.mean(xm, axis=-1, keepdims=True)
    var = jnp.mean((xm - mean) ** 2, axis=-1, keepdims=True)
    y = (xm - mean) / jnp.sqrt(var + EPS)
    y = y * gamma.astype(jnp.float32) + beta.astype(jnp.float32)
    return (y @ weight.astype(jnp.float32).T).astype(x.dtype)


if __name__ == "__main__":
    key = jax.random.PRNGKey(0)
    k1, k2, k3, k4, k5 = jax.random.split(key, 5)

    dim = 4
    d = 2 * dim
    # Odd sequence length exercises the pad-to-even path.
    x = jax.random.normal(k1, (2, 9, dim), dtype=jnp.float32)
    weight = 0.2 * jax.random.normal(k2, (d, d), dtype=jnp.float32)  # (out, in)
    gamma = 1.0 + 0.1 * jax.random.normal(k3, (d,), dtype=jnp.float32)
    beta = 0.1 * jax.random.normal(k4, (d,), dtype=jnp.float32)

    y = jax.block_until_ready(patch_merging_1d(x, weight, gamma, beta))
    y_ref = _reference(x, weight, gamma, beta)
    assert y.shape == (2, 5, d) and y.dtype == x.dtype
    assert jnp.allclose(y, y_ref, atol=1e-4, rtol=1e-4), "odd-h mismatch"

    # Even sequence length path.
    x2 = jax.random.normal(k5, (2, 8, dim), dtype=jnp.float32)
    y2 = jax.block_until_ready(patch_merging_1d(x2, weight, gamma, beta))
    assert jnp.allclose(y2, _reference(x2, weight, gamma, beta),
                        atol=1e-4, rtol=1e-4), "even-h mismatch"

    print("KERNEL_OK")
</pallas_src>

<mosaic_0001>
module attributes {stable_mosaic.version = 11 : i64} {
  func.func @_merge_ln_linear_kernel(%arg0: i32, %arg1: memref<16x8xf32, #tpu.memory_space<vmem>>, %arg2: memref<1x8xf32, #tpu.memory_space<vmem>>, %arg3: memref<1x8xf32, #tpu.memory_space<vmem>>, %arg4: memref<8x8xf32, #tpu.memory_space<vmem>>, %arg5: memref<16x8xf32, #tpu.memory_space<vmem>>) attributes {dimension_semantics = [#tpu.dimension_semantics<parallel>], iteration_bounds = array<i64: 1>, scalar_prefetch = 0 : i64, scratch_operands = 0 : i64, tpu.core_type = #tpu.core_type<tc>, window_params = [{transform_indices = @transform_0, window_bounds = array<i64: 16, 8>}, {pipeline_mode = #tpu.pipeline_mode<synchronous>, transform_indices = @transform_1, window_bounds = array<i64: 1, 8>}, {pipeline_mode = #tpu.pipeline_mode<synchronous>, transform_indices = @transform_2, window_bounds = array<i64: 1, 8>}, {pipeline_mode = #tpu.pipeline_mode<synchronous>, transform_indices = @transform_3, window_bounds = array<i64: 8, 8>}, {transform_indices = @transform_4, window_bounds = array<i64: 16, 8>}]} {
    %c0 = arith.constant 0 : index
    %c0_0 = arith.constant 0 : index
    %0 = vector.load %arg1[%c0, %c0_0] : memref<16x8xf32, #tpu.memory_space<vmem>>, vector<16x8xf32>
    %cst = arith.constant dense<0.000000e+00> : vector<16xf32>
    %1 = vector.multi_reduction <add>, %0, %cst [1] : vector<16x8xf32> to vector<16xf32>
    %2 = vector.shape_cast %1 : vector<16xf32> to vector<16x1xf32>
    %cst_1 = arith.constant 8.000000e+00 : f32
    %3 = vector.broadcast %cst_1 : f32 to vector<16x1xf32>
    %4 = arith.divf %2, %3 : vector<16x1xf32>
    %5 = vector.broadcast %4 : vector<16x1xf32> to vector<16x8xf32>
    %6 = arith.subf %0, %5 : vector<16x8xf32>
    %7 = arith.mulf %6, %6 : vector<16x8xf32>
    %cst_2 = arith.constant dense<0.000000e+00> : vector<16xf32>
    %8 = vector.multi_reduction <add>, %7, %cst_2 [1] : vector<16x8xf32> to vector<16xf32>
    %9 = vector.shape_cast %8 : vector<16xf32> to vector<16x1xf32>
    %cst_3 = arith.constant 8.000000e+00 : f32
    %10 = vector.broadcast %cst_3 : f32 to vector<16x1xf32>
    %11 = arith.divf %9, %10 : vector<16x1xf32>
    %cst_4 = arith.constant 9.99999974E-6 : f32
    %12 = vector.broadcast %cst_4 : f32 to vector<16x1xf32>
    %13 = arith.addf %11, %12 : vector<16x1xf32>
    %14 = math.rsqrt %13 : vector<16x1xf32>
    %15 = vector.broadcast %14 : vector<16x1xf32> to vector<16x8xf32>
    %16 = arith.mulf %6, %15 : vector<16x8xf32>
    %c0_5 = arith.constant 0 : index
    %c0_6 = arith.constant 0 : index
    %17 = vector.load %arg2[%c0_5, %c0_6] : memref<1x8xf32, #tpu.memory_space<vmem>>, vector<1x8xf32>
    %18 = vector.broadcast %17 : vector<1x8xf32> to vector<16x8xf32>
    %19 = arith.mulf %16, %18 : vector<16x8xf32>
    %c0_7 = arith.constant 0 : index
    %c0_8 = arith.constant 0 : index
    %20 = vector.load %arg3[%c0_7, %c0_8] : memref<1x8xf32, #tpu.memory_space<vmem>>, vector<1x8xf32>
    %21 = vector.broadcast %20 : vector<1x8xf32> to vector<16x8xf32>
    %22 = arith.addf %19, %21 : vector<16x8xf32>
    %c0_9 = arith.constant 0 : index
    %c0_10 = arith.constant 0 : index
    %23 = vector.load %arg4[%c0_9, %c0_10] : memref<8x8xf32, #tpu.memory_space<vmem>>, vector<8x8xf32>
    %cst_11 = arith.constant dense<0.000000e+00> : vector<16x8xf32>
    %24 = tpu.matmul %22, %23, %cst_11 {dimension_numbers = #tpu.dot_dimension_numbers<[1], [0], [0], [1], [0, 0, 1, 1], [], []>} : vector<16x8xf32>, vector<8x8xf32>, vector<16x8xf32> -> vector<16x8xf32>
    %c0_12 = arith.constant 0 : index
    %c0_13 = arith.constant 0 : index
    %25 = vector.load %arg5[%c0_12, %c0_13] : memref<16x8xf32, #tpu.memory_space<vmem>>, vector<16x8xf32>
    tpu.vector_store %arg5[%c0_12, %c0_13], %24 {strides = array<i32>} : memref<16x8xf32, #tpu.memory_space<vmem>>, vector<16x8xf32>,
    return
  }
  func.func @transform_0(%arg0: i32) -> (i32, i32) {
    %c0_i32 = arith.constant 0 : i32
    %c0_i32_0 = arith.constant 0 : i32
    return %arg0, %c0_i32 : i32, i32
  }
  func.func @transform_1(%arg0: i32) -> (i32, i32) {
    %c0_i32 = arith.constant 0 : i32
    %c0_i32_0 = arith.constant 0 : i32
    %c0_i32_1 = arith.constant 0 : i32
    return %c0_i32, %c0_i32_0 : i32, i32
  }
  func.func @transform_2(%arg0: i32) -> (i32, i32) {
    %c0_i32 = arith.constant 0 : i32
    %c0_i32_0 = arith.constant 0 : i32
    %c0_i32_1 = arith.constant 0 : i32
    return %c0_i32, %c0_i32_0 : i32, i32
  }
  func.func @transform_3(%arg0: i32) -> (i32, i32) {
    %c0_i32 = arith.constant 0 : i32
    %c0_i32_0 = arith.constant 0 : i32
    %c0_i32_1 = arith.constant 0 : i32
    return %c0_i32, %c0_i32_0 : i32, i32
  }
  func.func @transform_4(%arg0: i32) -> (i32, i32) {
    %c0_i32 = arith.constant 0 : i32
    %c0_i32_0 = arith.constant 0 : i32
    return %arg0, %c0_i32 : i32, i32
  }
}

</mosaic_0001>

<bundles_post_ra>
// kernel: tpu_custom_call.1
= control target key start
LH: loop header
LB: loop body
LE: loop exit
PB: predicated region body
PF: predicated region fallthrough
CT: control target
= control target key end

     0   :  { %vm19_vm0 = vcmask 64512   ;;  %s223_s0 = inlined_call_operand.vmem [shape: f32[16,8], index: 0, kind: input, shape index: {}]   ;;  %s224_s3 = inlined_call_operand.vmem [shape: f32[8,8], index: 3, kind: input, shape index: {}]   ;;  %s225_s1 = inlined_call_operand.vmem [shape: f32[1,8], index: 1, kind: input, shape index: {}]   ;;  %s226_s2 = inlined_call_operand.vmem [shape: f32[1,8], index: 2, kind: input, shape index: {}]   ;;  %s227_s4 = inlined_call_operand.vmem [shape: f32[16,8], index: 4, kind: output, shape index: {}]  }
   0x1   :  { %v17_v0 = vld [vmem:[%s223_s0] sm:$0xff]  ;;  %v18_v1 = vld [vmem:[%s223_s0 + $0x8] sm:$0xff] }
   0x2   :  { %v20_v2 = vsel %vm19_vm0, %v17_v0, 0.0  ;;  %v23_v3 = vsel %vm19_vm0, %v18_v1, 0.0  ;;  %v65_v14 = vld [vmem:[%s224_s3] sm:$0xff] }
   0x3   :  { %21 = vadd.xlane.f32.xlu0 %v20_v2  ;;  %160 = vmatprep.subr.mxu0 %v65_v14  ;;  %v153_v22 = vld [vmem:[%s225_s1] ss:$0 sm:$0xff] }
   0x4   :  { %161 = vmatpush3.msra.mxu0 %v65_v14  ;;  %v154_v24 = vld [vmem:[%s226_s2] ss:$0 sm:$0xff] }
   0x7   :  { %24 = vadd.xlane.f32.xlu0 %v23_v3 }
  0x90   :  { %v22_v4 = vpop.xlane.xlu0 %21 }
  0x91   :  { %v27_v5 = vmul.f32 0.125, %v22_v4 }
  0x93   :  { %v29_v6 = vsub.f32 %v17_v0, %v27_v5 }
  0x94   :  { %v25_v7 = vpop.xlane.xlu0 %24 }
  0x95   :  { %v28_v8 = vmul.f32 0.125, %v25_v7  ;;  %v31_v9 = vmul.f32 %v29_v6, %v29_v6 }
  0x97   :  { %v30_v10 = vsub.f32 %v18_v1, %v28_v8  ;;  %v33_v11 = vsel %vm19_vm0, %v31_v9, 0.0 }
  0x98   :  { %34 = vadd.xlane.f32.xlu1 %v33_v11 }
  0x99   :  { %v32_v12 = vmul.f32 %v30_v10, %v30_v10 }
  0x9b   :  { %v36_v13 = vsel %vm19_vm0, %v32_v12, 0.0 }
  0x9c   :  { %37 = vadd.xlane.f32.xlu1 %v36_v13 }
 0x125   :  { %v35_v15 = vpop.xlane.xlu1 %34 }
 0x126   :  { %v39_v16 = vmul.f32 0.125, %v35_v15 }
 0x128   :  { %v41_v17 = vadd.f32 1e-05, %v39_v16 }
 0x129   :  { %v38_v18 = vpop.xlane.xlu1 %37 }
 0x12a   :  { %165 = vrsqrt.f32 %v41_v17  ;;  %v40_v19 = vmul.f32 0.125, %v38_v18 }
 0x12c   :  { %v42_v20 = vadd.f32 1e-05, %v40_v19 }
 0x12e   :  { %167 = vrsqrt.f32 %v42_v20 }
 0x134   :  { %v166_v21 = vpop.eup %165 }
 0x135   :  { %v45_v23 = vmul.f32 %v166_v21, %v29_v6 }
 0x137   :  { %v54_v25 = vmul.f32 %v153_v22, %v45_v23 }
 0x138   :  { %v168_v26 = vpop.eup %167 }
 0x139   :  { %v46_v27 = vmul.f32 %v168_v26, %v30_v10  ;;  %v63_v28 = vadd.f32 %v154_v24, %v54_v25 }
 0x13b   :  { %v55_v29 = vmul.f32 %v153_v22, %v46_v27  ;;  %162 = vmatprep.mubr.msk.f32.mxu0 %vm19_vm0, %v63_v28 }
 0x13d   :  { %v64_v30 = vadd.f32 %v154_v24, %v55_v29 }
 0x13f   :  { %163 = vmatmul.mubr.msk.f32.vlgmr.msra.gmra.mrb[0].mxu0 %vm19_vm0, %v64_v30 }
 0x212   :  { %v164_v31 = vpop.f32.mrb[0].mxu0 }
 0x213   :  { %148 = vst.msk [vmem:[%s227_s4 + $0x8] sm:$0xff] %vm19_vm0, %v164_v31  ;;  %v138_v32 = vpop.f32.mrb[1].mxu0 }
 0x214   :  { %147 = vst.msk [vmem:[%s227_s4] sm:$0xff] %vm19_vm0, %v138_v32 }

</bundles_post_ra>
